<compile_context>
chip_gen: v5e
topology: v5e:2x2
jax: 0.10.0
libtpu: 0.0.40
codegen_flags: <defaults>
</compile_context>

<pallas_src>
import functools

import jax
import jax.numpy as jnp
from jax.experimental import pallas as pl
from jax.experimental.pallas import tpu as pltpu

BN_EPS = 1e-5


# ---------------------------------------------------------------------------
# helpers
# ---------------------------------------------------------------------------
def _round_up(x: int, m: int) -> int:
    return ((x + m - 1) // m) * m


def _pad2d(a, rows: int, cols: int, value: float = 0.0):
    r, c = a.shape
    if r == rows and c == cols:
        return a
    return jnp.pad(a, ((0, rows - r), (0, cols - c)), constant_values=value)


def _vmem_limit_bytes(working_set_bytes: int) -> int:
    """Comfortable VMEM limit, clamped to the current chip's physical capacity."""
    limit = max(4 * working_set_bytes, 8 * 1024 * 1024)
    try:
        cap = pltpu.get_tpu_info().vmem_capacity_bytes
        limit = min(limit, int(cap * 0.75))
    except Exception:  # conservative fallback if the query is unavailable
        limit = min(limit, 32 * 1024 * 1024)
    return int(limit)


# ---------------------------------------------------------------------------
# Fused Pallas kernel: whole MLP, everything VMEM-resident
# ---------------------------------------------------------------------------
def _fused_mlp_kernel(*refs, num_hidden, real_n, n_pad):
    """refs = (x, [w,gamma,beta] * num_hidden, w_final, b_final, out)."""
    x_ref = refs[0]
    hidden_refs = refs[1:1 + 3 * num_hidden]
    wf_ref, bf_ref, o_ref = refs[1 + 3 * num_hidden:]

    h = x_ref[...].astype(jnp.float32)                       # (n_pad, in_pad)
    inv_n = 1.0 / float(real_n)

    # Row mask for padded batch rows (only needed if the batch was actually padded).
    if n_pad > real_n:
        row_ids = jax.lax.broadcasted_iota(jnp.int32, (n_pad, 1), 0)
        row_mask = row_ids < real_n
    else:
        row_mask = None

    for l in range(num_hidden):
        w_ref, g_ref, b_ref = hidden_refs[3 * l:3 * l + 3]
        # Linear (no bias: it cancels exactly under the BN mean subtraction, and keeps
        # padded rows exactly zero so the stats sums below are correct).
        z = jnp.dot(h, w_ref[...], preferred_element_type=jnp.float32)  # (n_pad, d)

        # Train-mode BatchNorm1d over the *real* batch (padded rows contribute zeros).
        s1 = jnp.sum(z, axis=0, keepdims=True)
        s2 = jnp.sum(z * z, axis=0, keepdims=True)
        mean = s1 * inv_n
        var = jnp.maximum(s2 * inv_n - mean * mean, 0.0)
        inv_std = jax.lax.rsqrt(var + BN_EPS)
        scale = g_ref[...] * inv_std
        shift = b_ref[...] - mean * scale
        a = jnp.maximum(z * scale + shift, 0.0)               # BN + ReLU (Dropout p=0 == id)

        # Re-zero padded rows: ReLU(beta - mean*scale) is generally nonzero and would
        # otherwise corrupt the next layer's batch statistics.
        if row_mask is not None:
            a = jnp.where(row_mask, a, 0.0)
        h = a

    out = jnp.dot(h, wf_ref[...], preferred_element_type=jnp.float32) + bf_ref[...]
    o_ref[...] = out.astype(o_ref.dtype)


# ---------------------------------------------------------------------------
# Parameters (PyTorch-default-style init, fp32, unpadded) and Pallas-side prep
# ---------------------------------------------------------------------------
def init_mlp_params(key, input_dim, hidden_dim, output_dim, num_hidden_layers):
    assert num_hidden_layers >= 1
    dims = [input_dim] + [hidden_dim] * num_hidden_layers
    params = {"hidden": [], "final": None}
    for in_dim, out_dim in zip(dims, dims[1:]):
        key, kw, kb = jax.random.split(key, 3)
        bound = 1.0 / (in_dim ** 0.5)
        w = jax.random.uniform(kw, (in_dim, out_dim), jnp.float32, -bound, bound)
        b = jax.random.uniform(kb, (1, out_dim), jnp.float32, -bound, bound)
        gamma = jnp.ones((1, out_dim), jnp.float32)   # BatchNorm1d affine defaults
        beta = jnp.zeros((1, out_dim), jnp.float32)
        params["hidden"].append((w, b, gamma, beta))
    key, kw, kb = jax.random.split(key, 3)
    bound = 1.0 / (hidden_dim ** 0.5)
    wf = jax.random.uniform(kw, (hidden_dim, output_dim), jnp.float32, -bound, bound)
    bf = jax.random.uniform(kb, (1, output_dim), jnp.float32, -bound, bound)
    params["final"] = (wf, bf)
    return params


def prepare_pallas_params(params):
    """Pad all feature dims to lane-dense multiples of 128; drop hidden biases (they cancel
    exactly under the BatchNorm mean subtraction).  Weights stay fp32 (VMEM-resident)."""
    hidden = []
    for (w, _b, gamma, beta) in params["hidden"]:
        in_dim, out_dim = w.shape
        in_pad, out_pad = _round_up(in_dim, 128), _round_up(out_dim, 128)
        hidden.append((_pad2d(w, in_pad, out_pad),
                       _pad2d(gamma, 1, out_pad, value=1.0),
                       _pad2d(beta, 1, out_pad, value=0.0)))
    wf, bf = params["final"]
    in_dim, out_dim = wf.shape
    in_pad, out_pad = _round_up(in_dim, 128), _round_up(out_dim, 128)
    return tuple(hidden), (_pad2d(wf, in_pad, out_pad), _pad2d(bf, 1, out_pad, value=0.0))


# ---------------------------------------------------------------------------
# Forward passes (fused Pallas and pure-JAX fp32 reference)
# ---------------------------------------------------------------------------
@functools.partial(jax.jit, static_argnames=("out_dim",))
def mlp_forward_pallas(x, hidden_params, final_params, *, out_dim):
    n, in_dim = x.shape
    n_pad = _round_up(max(n, 8), 16)
    in_pad = hidden_params[0][0].shape[0]
    x_p = _pad2d(x.astype(jnp.float32), n_pad, in_pad)

    wf, bf = final_params
    out_pad = wf.shape[1]
    num_hidden = len(hidden_params)

    inputs = [x_p]
    for (w, g, b) in hidden_params:
        inputs += [w, g, b]
    inputs += [wf, bf]

    # Cost estimate / VMEM budget.
    flops = 0
    bytes_accessed = x_p.size * 4 + n_pad * out_pad * 4
    h_cols = in_pad
    for (w, _g, _b) in hidden_params:
        flops += 2 * n_pad * w.shape[0] * w.shape[1]
        h_cols = w.shape[1]
    flops += 2 * n_pad * wf.shape[0] * wf.shape[1]
    for a in inputs[1:]:
        bytes_accessed += a.size * 4
    working_set = bytes_accessed + 2 * n_pad * h_cols * 4   # params + in/out + live activations

    out = pl.pallas_call(
        functools.partial(_fused_mlp_kernel, num_hidden=num_hidden, real_n=n, n_pad=n_pad),
        out_shape=jax.ShapeDtypeStruct((n_pad, out_pad), jnp.float32),
        in_specs=[pl.BlockSpec(memory_space=pltpu.MemorySpace.VMEM)] * len(inputs),
        out_specs=pl.BlockSpec(memory_space=pltpu.MemorySpace.VMEM),
        compiler_params=pltpu.CompilerParams(
            vmem_limit_bytes=_vmem_limit_bytes(working_set)),
        cost_estimate=pl.CostEstimate(
            flops=flops, transcendentals=0, bytes_accessed=bytes_accessed),
    )(*inputs)
    return out[:n, :out_dim]


def mlp_forward_ref(x, params):
    h = x
    for (w, b, gamma, beta) in params["hidden"]:
        h = h @ w + b
        mean = jnp.mean(h, axis=0, keepdims=True)
        var = jnp.mean((h - mean) ** 2, axis=0, keepdims=True)
        h = (h - mean) * jax.lax.rsqrt(var + BN_EPS) * gamma + beta
        h = jnp.maximum(h, 0.0)   # Dropout(p=0.0) == identity
    wf, bf = params["final"]
    return h @ wf + bf


# ---------------------------------------------------------------------------
if __name__ == "__main__":
    batch = 8
    input_dim = 16
    hidden_dim = 32
    output_dim = 8
    num_hidden_layers = 2

    key = jax.random.PRNGKey(0)
    key, kx = jax.random.split(key)
    x = jax.random.normal(kx, (batch, input_dim), jnp.float32)

    params = init_mlp_params(key, input_dim, hidden_dim, output_dim, num_hidden_layers)
    hidden_p, final_p = prepare_pallas_params(params)

    out = mlp_forward_pallas(x, hidden_p, final_p, out_dim=output_dim)
    out = jax.block_until_ready(out)

    ref = mlp_forward_ref(x, params)
    assert out.shape == (batch, output_dim)
    # MXU matmul precision vs. pure-fp32 reference -> modest tolerance.
    assert jnp.allclose(out, ref, atol=5e-2, rtol=5e-2), "Pallas output mismatch vs reference"

    print("KERNEL_OK")
</pallas_src>

<mosaic_0001>
module attributes {stable_mosaic.version = 11 : i64} {
  func.func @_fused_mlp_kernel(%arg0: memref<16x128xf32, #tpu.memory_space<vmem>>, %arg1: memref<128x128xf32, #tpu.memory_space<vmem>>, %arg2: memref<1x128xf32, #tpu.memory_space<vmem>>, %arg3: memref<1x128xf32, #tpu.memory_space<vmem>>, %arg4: memref<128x128xf32, #tpu.memory_space<vmem>>, %arg5: memref<1x128xf32, #tpu.memory_space<vmem>>, %arg6: memref<1x128xf32, #tpu.memory_space<vmem>>, %arg7: memref<128x128xf32, #tpu.memory_space<vmem>>, %arg8: memref<1x128xf32, #tpu.memory_space<vmem>>, %arg9: memref<16x128xf32, #tpu.memory_space<vmem>>) attributes {dimension_semantics = [], scalar_prefetch = 0 : i64, scratch_operands = 0 : i64, tpu.core_type = #tpu.core_type<tc>} {
    %c0 = arith.constant 0 : index
    %c0_0 = arith.constant 0 : index
    %0 = vector.load %arg0[%c0, %c0_0] : memref<16x128xf32, #tpu.memory_space<vmem>>, vector<16x128xf32>
    %1 = tpu.iota {dimensions = array<i32: 0>} : vector<16x1xi32>
    %c8_i32 = arith.constant 8 : i32
    %2 = vector.broadcast %c8_i32 : i32 to vector<16x1xi32>
    %3 = arith.cmpi slt, %1, %2 : vector<16x1xi32>
    %c0_1 = arith.constant 0 : index
    %c0_2 = arith.constant 0 : index
    %4 = vector.load %arg1[%c0_1, %c0_2] : memref<128x128xf32, #tpu.memory_space<vmem>>, vector<128x128xf32>
    %cst = arith.constant dense<0.000000e+00> : vector<16x128xf32>
    %5 = tpu.matmul %0, %4, %cst {dimension_numbers = #tpu.dot_dimension_numbers<[1], [0], [0], [1], [0, 0, 1, 1], [], []>} : vector<16x128xf32>, vector<128x128xf32>, vector<16x128xf32> -> vector<16x128xf32>
    %cst_3 = arith.constant dense<0.000000e+00> : vector<128xf32>
    %6 = vector.multi_reduction <add>, %5, %cst_3 [0] : vector<16x128xf32> to vector<128xf32>
    %7 = vector.shape_cast %6 : vector<128xf32> to vector<1x128xf32>
    %8 = arith.mulf %5, %5 : vector<16x128xf32>
    %cst_4 = arith.constant dense<0.000000e+00> : vector<128xf32>
    %9 = vector.multi_reduction <add>, %8, %cst_4 [0] : vector<16x128xf32> to vector<128xf32>
    %10 = vector.shape_cast %9 : vector<128xf32> to vector<1x128xf32>
    %cst_5 = arith.constant 1.250000e-01 : f32
    %11 = vector.broadcast %cst_5 : f32 to vector<1x128xf32>
    %12 = arith.mulf %7, %11 : vector<1x128xf32>
    %cst_6 = arith.constant 1.250000e-01 : f32
    %13 = vector.broadcast %cst_6 : f32 to vector<1x128xf32>
    %14 = arith.mulf %10, %13 : vector<1x128xf32>
    %15 = arith.mulf %12, %12 : vector<1x128xf32>
    %16 = arith.subf %14, %15 : vector<1x128xf32>
    %cst_7 = arith.constant 0.000000e+00 : f32
    %17 = vector.broadcast %cst_7 : f32 to vector<1x128xf32>
    %18 = arith.maximumf %16, %17 : vector<1x128xf32>
    %cst_8 = arith.constant 9.99999974E-6 : f32
    %19 = vector.broadcast %cst_8 : f32 to vector<1x128xf32>
    %20 = arith.addf %18, %19 : vector<1x128xf32>
    %21 = math.rsqrt %20 : vector<1x128xf32>
    %c0_9 = arith.constant 0 : index
    %c0_10 = arith.constant 0 : index
    %22 = vector.load %arg2[%c0_9, %c0_10] : memref<1x128xf32, #tpu.memory_space<vmem>>, vector<1x128xf32>
    %23 = arith.mulf %22, %21 : vector<1x128xf32>
    %c0_11 = arith.constant 0 : index
    %c0_12 = arith.constant 0 : index
    %24 = vector.load %arg3[%c0_11, %c0_12] : memref<1x128xf32, #tpu.memory_space<vmem>>, vector<1x128xf32>
    %25 = arith.mulf %12, %23 : vector<1x128xf32>
    %26 = arith.subf %24, %25 : vector<1x128xf32>
    %27 = vector.broadcast %23 : vector<1x128xf32> to vector<16x128xf32>
    %28 = arith.mulf %5, %27 : vector<16x128xf32>
    %29 = vector.broadcast %26 : vector<1x128xf32> to vector<16x128xf32>
    %30 = arith.addf %28, %29 : vector<16x128xf32>
    %cst_13 = arith.constant 0.000000e+00 : f32
    %31 = vector.broadcast %cst_13 : f32 to vector<16x128xf32>
    %32 = arith.maximumf %30, %31 : vector<16x128xf32>
    %cst_14 = arith.constant 0.000000e+00 : f32
    %33 = vector.shape_cast %3 : vector<16x1xi1> to vector<16x1xi1>
    %34 = vector.broadcast %33 : vector<16x1xi1> to vector<16x128xi1>
    %35 = vector.broadcast %cst_14 : f32 to vector<16x128xf32>
    %36 = arith.select %34, %32, %35 : vector<16x128xi1>, vector<16x128xf32>
    %c0_15 = arith.constant 0 : index
    %c0_16 = arith.constant 0 : index
    %37 = vector.load %arg4[%c0_15, %c0_16] : memref<128x128xf32, #tpu.memory_space<vmem>>, vector<128x128xf32>
    %cst_17 = arith.constant dense<0.000000e+00> : vector<16x128xf32>
    %38 = tpu.matmul %36, %37, %cst_17 {dimension_numbers = #tpu.dot_dimension_numbers<[1], [0], [0], [1], [0, 0, 1, 1], [], []>} : vector<16x128xf32>, vector<128x128xf32>, vector<16x128xf32> -> vector<16x128xf32>
    %cst_18 = arith.constant dense<0.000000e+00> : vector<128xf32>
    %39 = vector.multi_reduction <add>, %38, %cst_18 [0] : vector<16x128xf32> to vector<128xf32>
    %40 = vector.shape_cast %39 : vector<128xf32> to vector<1x128xf32>
    %41 = arith.mulf %38, %38 : vector<16x128xf32>
    %cst_19 = arith.constant dense<0.000000e+00> : vector<128xf32>
    %42 = vector.multi_reduction <add>, %41, %cst_19 [0] : vector<16x128xf32> to vector<128xf32>
    %43 = vector.shape_cast %42 : vector<128xf32> to vector<1x128xf32>
    %cst_20 = arith.constant 1.250000e-01 : f32
    %44 = vector.broadcast %cst_20 : f32 to vector<1x128xf32>
    %45 = arith.mulf %40, %44 : vector<1x128xf32>
    %cst_21 = arith.constant 1.250000e-01 : f32
    %46 = vector.broadcast %cst_21 : f32 to vector<1x128xf32>
    %47 = arith.mulf %43, %46 : vector<1x128xf32>
    %48 = arith.mulf %45, %45 : vector<1x128xf32>
    %49 = arith.subf %47, %48 : vector<1x128xf32>
    %cst_22 = arith.constant 0.000000e+00 : f32
    %50 = vector.broadcast %cst_22 : f32 to vector<1x128xf32>
    %51 = arith.maximumf %49, %50 : vector<1x128xf32>
    %cst_23 = arith.constant 9.99999974E-6 : f32
    %52 = vector.broadcast %cst_23 : f32 to vector<1x128xf32>
    %53 = arith.addf %51, %52 : vector<1x128xf32>
    %54 = math.rsqrt %53 : vector<1x128xf32>
    %c0_24 = arith.constant 0 : index
    %c0_25 = arith.constant 0 : index
    %55 = vector.load %arg5[%c0_24, %c0_25] : memref<1x128xf32, #tpu.memory_space<vmem>>, vector<1x128xf32>
    %56 = arith.mulf %55, %54 : vector<1x128xf32>
    %c0_26 = arith.constant 0 : index
    %c0_27 = arith.constant 0 : index
    %57 = vector.load %arg6[%c0_26, %c0_27] : memref<1x128xf32, #tpu.memory_space<vmem>>, vector<1x128xf32>
    %58 = arith.mulf %45, %56 : vector<1x128xf32>
    %59 = arith.subf %57, %58 : vector<1x128xf32>
    %60 = vector.broadcast %56 : vector<1x128xf32> to vector<16x128xf32>
    %61 = arith.mulf %38, %60 : vector<16x128xf32>
    %62 = vector.broadcast %59 : vector<1x128xf32> to vector<16x128xf32>
    %63 = arith.addf %61, %62 : vector<16x128xf32>
    %cst_28 = arith.constant 0.000000e+00 : f32
    %64 = vector.broadcast %cst_28 : f32 to vector<16x128xf32>
    %65 = arith.maximumf %63, %64 : vector<16x128xf32>
    %cst_29 = arith.constant 0.000000e+00 : f32
    %66 = vector.shape_cast %3 : vector<16x1xi1> to vector<16x1xi1>
    %67 = vector.broadcast %66 : vector<16x1xi1> to vector<16x128xi1>
    %68 = vector.broadcast %cst_29 : f32 to vector<16x128xf32>
    %69 = arith.select %67, %65, %68 : vector<16x128xi1>, vector<16x128xf32>
    %c0_30 = arith.constant 0 : index
    %c0_31 = arith.constant 0 : index
    %70 = vector.load %arg7[%c0_30, %c0_31] : memref<128x128xf32, #tpu.memory_space<vmem>>, vector<128x128xf32>
    %cst_32 = arith.constant dense<0.000000e+00> : vector<16x128xf32>
    %71 = tpu.matmul %69, %70, %cst_32 {dimension_numbers = #tpu.dot_dimension_numbers<[1], [0], [0], [1], [0, 0, 1, 1], [], []>} : vector<16x128xf32>, vector<128x128xf32>, vector<16x128xf32> -> vector<16x128xf32>
    %c0_33 = arith.constant 0 : index
    %c0_34 = arith.constant 0 : index
    %72 = vector.load %arg8[%c0_33, %c0_34] : memref<1x128xf32, #tpu.memory_space<vmem>>, vector<1x128xf32>
    %73 = vector.broadcast %72 : vector<1x128xf32> to vector<16x128xf32>
    %74 = arith.addf %71, %73 : vector<16x128xf32>
    %c0_35 = arith.constant 0 : index
    %c0_36 = arith.constant 0 : index
    %75 = vector.load %arg9[%c0_35, %c0_36] : memref<16x128xf32, #tpu.memory_space<vmem>>, vector<16x128xf32>
    tpu.vector_store %arg9[%c0_35, %c0_36], %74 {strides = array<i32>} : memref<16x128xf32, #tpu.memory_space<vmem>>, vector<16x128xf32>,
    return
  }
}

</mosaic_0001>

<bundles_post_ra>
// kernel: mlp_forward_pallas.1
= control target key start
LH: loop header
LB: loop body
LE: loop exit
PB: predicated region body
PF: predicated region fallthrough
CT: control target
= control target key end

     0   :  { %14 = vsyncpa [#allocation3], 0  ;;  %s530_s0 = inlined_call_operand.vmem [shape: f32[16,128], index: 0, kind: input, shape index: {}]   ;;  %s531_s1 = inlined_call_operand.hbm [shape: f32[128,128], index: 1, kind: input, shape index: {}]   ;;  %s532_s2 = inlined_call_operand.vmem [shape: f32[1,128], index: 2, kind: input, shape index: {}]   ;;  %s533_s3 = inlined_call_operand.vmem [shape: f32[1,128], index: 3, kind: input, shape index: {}]   ;;  %s534_s4 = inlined_call_operand.hbm [shape: f32[128,128], index: 4, kind: input, shape index: {}]   ;;  %s535_s5 = inlined_call_operand.vmem [shape: f32[1,128], index: 5, kind: input, shape index: {}]   ;;  %s536_s6 = inlined_call_operand.vmem [shape: f32[1,128], index: 6, kind: input, shape index: {}]   ;;  %s537_s7 = inlined_call_operand.hbm [shape: f32[128,128], index: 7, kind: input, shape index: {}]   ;;  %s538_s8 = inlined_call_operand.vmem [shape: f32[1,128], index: 8, kind: input, shape index: {}]   ;;  %s539_s9 = inlined_call_operand.vmem [shape: f32[16,128], index: 9, kind: output, shape index: {}]  }
   0x1   :  { %15 = vsyncpa [#allocation5], 0  ;;  %s39_s11 = sshll.u32 %s534_s4, 4  ;;  %s424_s12 = smov [#allocation4]   ;;  %s40_s11 = int_to_ptr.hbm [resolvable:$true] %s39_s11 }
   0x2   :  { %s41_s13 = sshll.u32 %s424_s12, 4  ;;  %s22_s16 = sshll.u32 %s531_s1, 4  ;;  %s42_s13 = int_to_ptr.vmem [resolvable:$true] %s41_s13  ;;  %s23_s16 = int_to_ptr.hbm [resolvable:$true] %s22_s16 }
   0x3   :  { %s425_s17 = smov 128   ;;  %s426_s18 = smov 8  }
   0x4   :  { %47 = dma.hbm_to_vmem [thread:$0]  %s40_s11, 2048, %s42_s13, [#allocation5], %s425_s17, %s425_s17, %s426_s18  }
   0x5   :  { %s427_s19 = smov [#allocation2]   ;;  %s56_s23 = sshll.u32 %s537_s7, 4  ;;  %s57_s23 = int_to_ptr.hbm [resolvable:$true] %s56_s23 }
   0x6   :  { %s24_s20 = sshll.u32 %s427_s19, 4  ;;  %s428_s4 = smov [#allocation6]   ;;  %s25_s20 = int_to_ptr.vmem [resolvable:$true] %s24_s20 }
   0x7   :  { %30 = dma.hbm_to_vmem [thread:$0]  %s23_s16, 2048, %s25_s20, [#allocation3], %s425_s17, %s425_s17, %s426_s18  }
   0x8   :  { %s58_s24 = sshll.u32 %s428_s4, 4  ;;  %s59_s24 = int_to_ptr.vmem [resolvable:$true] %s58_s24 }
   0x9   :  { %64 = dma.hbm_to_vmem [thread:$0]  %s57_s23, 2048, %s59_s24, [#allocation5], %s425_s17, %s425_s17, %s426_s18  }
   0xa   :  { %420 = dma.done.wait [#allocation3], 2048  }
   0xb   :  { %421 = vsyncadd [#allocation3], 4294965248 }
   0xc   :  { %422 = dma.done.wait [#allocation5], 4096  }
   0xd   :  { %423 = vsyncadd [#allocation5], 4294963200  ;;  %v101_v0 = vld [vmem:[#allocation2 + $0x78] sm:$0xff]  ;;  %v100_v1 = vld [vmem:[#allocation2 + $0x70] sm:$0xff] }
   0xe   :  { %321 = vmatpush.msra.mxu3 %v101_v0  ;;  %102 = vmatpush.msra.mxu0 %v101_v0  ;;  %v99_v2 = vld [vmem:[#allocation2 + $0x68] sm:$0xff]  ;;  %v98_v3 = vld [vmem:[#allocation2 + $0x60] sm:$0xff]  ;;  %v97_v4 = vld [vmem:[#allocation2 + $0x58] sm:$0xff] }
   0xf   :  { %v96_v5 = vld [vmem:[#allocation2 + $0x50] sm:$0xff]  ;;  %v95_v6 = vld [vmem:[#allocation2 + $0x48] sm:$0xff]  ;;  %v94_v7 = vld [vmem:[#allocation2 + $0x40] sm:$0xff] }
  0x10   :  { %322 = vmatpush.msra.mxu3 %v100_v1  ;;  %103 = vmatpush.msra.mxu0 %v100_v1  ;;  %v93_v8 = vld [vmem:[#allocation2 + $0x38] sm:$0xff]  ;;  %v92_v9 = vld [vmem:[#allocation2 + $0x30] sm:$0xff]  ;;  %v91_v10 = vld [vmem:[#allocation2 + $0x28] sm:$0xff] }
  0x11   :  { %v90_v11 = vld [vmem:[#allocation2 + $0x20] sm:$0xff]  ;;  %v89_v12 = vld [vmem:[#allocation2 + $0x18] sm:$0xff]  ;;  %v88_v13 = vld [vmem:[#allocation2 + $0x10] sm:$0xff] }
  0x12   :  { %323 = vmatpush.msra.mxu3 %v99_v2  ;;  %104 = vmatpush.msra.mxu0 %v99_v2  ;;  %v87_v14 = vld [vmem:[#allocation2 + $0x8] sm:$0xff]  ;;  %v86_v15 = vld [vmem:[#allocation2] sm:$0xff]  ;;  %v195_v18 = vld [vmem:[#allocation4 + $0x78] sm:$0xff] }
  0x13   :  { %v80_v16 = vld [vmem:[%s530_s0 + $0x8] sm:$0xff]  ;;  %v79_v17 = vld [vmem:[%s530_s0] sm:$0xff]  ;;  %196 = vmatpush.msra.mxu1 %v195_v18  ;;  %v194_v19 = vld [vmem:[#allocation4 + $0x70] sm:$0xff] }
  0x14   :  { %324 = vmatpush.msra.mxu3 %v98_v3  ;;  %105 = vmatpush.msra.mxu0 %v98_v3  ;;  %v193_v20 = vld [vmem:[#allocation4 + $0x68] sm:$0xff]  ;;  %v192_v22 = vld [vmem:[#allocation4 + $0x60] sm:$0xff]  ;;  %v191_v24 = vld [vmem:[#allocation4 + $0x58] sm:$0xff] }
  0x15   :  { %197 = vmatpush.msra.mxu1 %v194_v19  ;;  %v190_v26 = vld [vmem:[#allocation4 + $0x50] sm:$0xff]  ;;  %v189_v29 = vld [vmem:[#allocation4 + $0x48] sm:$0xff]  ;;  %v188_v32 = vld [vmem:[#allocation4 + $0x40] sm:$0xff] }
  0x16   :  { %325 = vmatpush.msra.mxu3 %v97_v4  ;;  %106 = vmatpush.msra.mxu0 %v97_v4  ;;  %v187_v35 = vld [vmem:[#allocation4 + $0x38] sm:$0xff]  ;;  %v186_v38 = vld [vmem:[#allocation4 + $0x30] sm:$0xff]  ;;  %v185_v41 = vld [vmem:[#allocation4 + $0x28] sm:$0xff] }
  0x17   :  { %198 = vmatpush.msra.mxu1 %v193_v20  ;;  %v184_v44 = vld [vmem:[#allocation4 + $0x20] sm:$0xff]  ;;  %v183_v47 = vld [vmem:[#allocation4 + $0x18] sm:$0xff]  ;;  %v182_v50 = vld [vmem:[#allocation4 + $0x10] sm:$0xff] }
  0x18   :  { %326 = vmatpush.msra.mxu3 %v96_v5  ;;  %107 = vmatpush.msra.mxu0 %v96_v5  ;;  %v181_v53 = vld [vmem:[#allocation4 + $0x8] sm:$0xff]  ;;  %v180_v55 = vld [vmem:[#allocation4] sm:$0xff]  ;;  %v280_v19 = vld [vmem:[#allocation6 + $0x50] sm:$0xff] }
  0x19   :  { %199 = vmatpush.msra.mxu1 %v192_v22  ;;  %v157_v0 = vld [vmem:[%s532_s2] sm:$0x1] }
  0x1a   :  { %327 = vmatpush.msra.mxu3 %v95_v6  ;;  %108 = vmatpush.msra.mxu0 %v95_v6  ;;  %v159_v3 = vld [vmem:[%s533_s3] sm:$0x1] }
  0x1b   :  { %200 = vmatpush.msra.mxu1 %v191_v24 }
  0x1c   :  { %328 = vmatpush.msra.mxu3 %v94_v7  ;;  %109 = vmatpush.msra.mxu0 %v94_v7 }
  0x1d   :  { %201 = vmatpush.msra.mxu1 %v190_v26  ;;  %v278_v26 = vld [vmem:[#allocation6 + $0x40] sm:$0xff] }
  0x1e   :  { %329 = vmatpush.msra.mxu3 %v93_v8  ;;  %110 = vmatpush.msra.mxu0 %v93_v8 }
  0x1f   :  { %202 = vmatpush.msra.mxu1 %v189_v29  ;;  %v277_v29 = vld [vmem:[#allocation6 + $0x38] sm:$0xff] }
  0x20   :  { %330 = vmatpush.msra.mxu3 %v92_v9  ;;  %111 = vmatpush.msra.mxu0 %v92_v9 }
  0x21   :  { %203 = vmatpush.msra.mxu1 %v188_v32  ;;  %v276_v32 = vld [vmem:[#allocation6 + $0x30] sm:$0xff] }
  0x22   :  { %331 = vmatpush.msra.mxu3 %v91_v10  ;;  %112 = vmatpush.msra.mxu0 %v91_v10 }
  0x23   :  { %204 = vmatpush.msra.mxu1 %v187_v35  ;;  %v275_v35 = vld [vmem:[#allocation6 + $0x28] sm:$0xff] }
  0x24   :  { %332 = vmatpush.msra.mxu3 %v90_v11  ;;  %113 = vmatpush.msra.mxu0 %v90_v11  ;;  %v429_v11 = vmov 0.0  }
  0x25   :  { %205 = vmatpush.msra.mxu1 %v186_v38  ;;  %v274_v38 = vld [vmem:[#allocation6 + $0x20] sm:$0xff] }
  0x26   :  { %333 = vmatpush.msra.mxu3 %v89_v12  ;;  %114 = vmatpush.msra.mxu0 %v89_v12  ;;  %v285_v12 = vld [vmem:[#allocation6 + $0x78] sm:$0xff] }
  0x27   :  { %206 = vmatpush.msra.mxu1 %v185_v41  ;;  %290 = vmatpush.msra.mxu2 %v285_v12  ;;  %v273_v41 = vld [vmem:[#allocation6 + $0x18] sm:$0xff] }
  0x28   :  { %334 = vmatpush.msra.mxu3 %v88_v13  ;;  %115 = vmatpush.msra.mxu0 %v88_v13 }
  0x29   :  { %207 = vmatpush.msra.mxu1 %v184_v44  ;;  %v272_v44 = vld [vmem:[#allocation6 + $0x10] sm:$0xff] }
  0x2a   :  { %335 = vmatpush.msra.mxu3 %v87_v14  ;;  %116 = vmatpush.msra.mxu0 %v87_v14  ;;  %v284_v14 = vld [vmem:[#allocation6 + $0x70] sm:$0xff] }
  0x2b   :  { %208 = vmatpush.msra.mxu1 %v183_v47  ;;  %291 = vmatpush.msra.mxu2 %v284_v14  ;;  %v271_v47 = vld [vmem:[#allocation6 + $0x8] sm:$0xff] }
  0x2c   :  { %336 = vmatpush.msra.mxu3 %v86_v15  ;;  %117 = vmatpush.msra.mxu0 %v86_v15  ;;  %v283_v15 = vld [vmem:[#allocation6 + $0x68] sm:$0xff] }
  0x2d   :  { %121 = vmatmul.f32.vlgmr.msra.gmra.mxu3 %v80_v16  ;;  %118 = vmatmul.f32.vlgmr.msra.gmra.mxu0 %v79_v17  ;;  %v282_v16 = vld [vmem:[#allocation6 + $0x60] sm:$0xff]  ;;  %v281_v17 = vld [vmem:[#allocation6 + $0x58] sm:$0xff] }
  0x2e   :  { %209 = vmatpush.msra.mxu1 %v182_v50  ;;  %292 = vmatpush.msra.mxu2 %v283_v15 }
  0x30   :  { %210 = vmatpush.msra.mxu1 %v181_v53  ;;  %293 = vmatpush.msra.mxu2 %v282_v16 }
  0x32   :  { %211 = vmatpush.msra.mxu1 %v180_v55  ;;  %294 = vmatpush.msra.mxu2 %v281_v17 }
  0x34   :  { %295 = vmatpush.msra.mxu2 %v280_v19 }
  0xaa   :  { %v495_v21 = vpop.f32.mrf.mxu0 }
  0xab   :  { %v132_v23 = vmul.f32 %v495_v21, %v495_v21 }
  0xb0   :  { %v122_v25 = vpop.f32.mrf.mxu3 }
  0xb1   :  { %v125_v27 = vadd.f32 %v122_v25, %v495_v21  ;;  %v133_v28 = vmul.f32 %v122_v25, %v122_v25 }
  0xb3   :  { %v126_v30 = vrot.slane %v125_v27, 4  ;;  %v134_v31 = vadd.f32 %v133_v28, %v132_v23  ;;  %v279_v23 = vld [vmem:[#allocation6 + $0x48] sm:$0xff] }
  0xb4   :  { %296 = vmatpush.msra.mxu2 %v279_v23 }
  0xb5   :  { %v127_v33 = vadd.f32 %v126_v30, %v125_v27  ;;  %v135_v34 = vrot.slane %v134_v31, 4 }
  0xb6   :  { %297 = vmatpush.msra.mxu2 %v278_v26 }
  0xb7   :  { %v128_v36 = vrot.slane %v127_v33, 2  ;;  %v136_v37 = vadd.f32 %v135_v34, %v134_v31 }
  0xb8   :  { %298 = vmatpush.msra.mxu2 %v277_v29 }
  0xb9   :  { %v129_v39 = vadd.f32 %v128_v36, %v127_v33  ;;  %v137_v40 = vrot.slane %v136_v37, 2 }
  0xba   :  { %299 = vmatpush.msra.mxu2 %v276_v32 }
  0xbb   :  { %v130_v42 = vrot.slane %v129_v39, 1  ;;  %v138_v43 = vadd.f32 %v137_v40, %v136_v37 }
  0xbc   :  { %300 = vmatpush.msra.mxu2 %v275_v35 }
  0xbd   :  { %v131_v45 = vadd.f32 %v130_v42, %v129_v39  ;;  %v139_v46 = vrot.slane %v138_v43, 1 }
  0xbe   :  { %301 = vmatpush.msra.mxu2 %v274_v38 }
  0xbf   :  { %v140_v48 = vadd.f32 %v139_v46, %v138_v43  ;;  %v141_v49 = vmul.f32 0.125, %v131_v45 }
  0xc0   :  { %302 = vmatpush.msra.mxu2 %v273_v41 }
  0xc1   :  { %v142_v51 = vmul.f32 0.125, %v140_v48  ;;  %v143_v52 = vmul.f32 %v141_v49, %v141_v49 }
  0xc2   :  { %303 = vmatpush.msra.mxu2 %v272_v44 }
  0xc3   :  { %v144_v54 = vsub.f32 %v142_v51, %v143_v52 }
  0xc4   :  { %304 = vmatpush.msra.mxu2 %v271_v47 }
  0xc5   :  { %v145_v56 = vmax.f32 %v144_v54, 0.0 }
  0xc7   :  { %v146_v57 = vadd.f32 1e-05, %v145_v56 }
  0xc9   :  { %344 = vrsqrt.f32 %v146_v57  ;;  %vm153_vm1 = vweird.f32 %v146_v57 }
  0xcf   :  { %v345_v58 = vpop.eup %344 }
  0xd0   :  { %v148_v59 = vmul.f32 %v345_v58, %v146_v57  ;;  %vm154_vm0 = vweird.f32 %v345_v58 }
  0xd1   :  { %vm155_vm2 = vmor %vm153_vm1, %vm154_vm0 }
  0xd2   :  { %v149_v60 = vmul.f32 %v345_v58, %v148_v59 }
  0xd4   :  { %v150_v61 = vmul.f32 0.5, %v149_v60 }
  0xd6   :  { %v151_v62 = vsub.f32 1.5, %v150_v61  ;;  %v253_v61 = vld [vmem:[%s536_s6] sm:$0x1] }
  0xd8   :  { %v152_v63 = vmul.f32 %v345_v58, %v151_v62 }
  0xda   :  { %v156_v1 = vsel %vm155_vm2, %v345_v58, %v152_v63  ;;  %v251_v58 = vld [vmem:[%s535_s5] sm:$0x1] }
  0xdb   :  { %v158_v2 = vmul.f32 %v157_v0, %v156_v1 }
  0xdd   :  { %v160_v4 = vmul.f32 %v158_v2, %v141_v49  ;;  %v163_v5 = vperm.slane %v158_v2, 0  ;;  %v270_v49 = vld [vmem:[#allocation6] sm:$0xff] }
  0xde   :  { %305 = vmatpush.msra.mxu2 %v270_v49 }
  0xdf   :  { %v161_v6 = vsub.f32 %v159_v3, %v160_v4  ;;  %v165_v7 = vmul.f32 %v163_v5, %v495_v21  ;;  %v343_v5 = vld [vmem:[%s538_s8] ss:$0 sm:$0xff] }
  0xe1   :  { %v168_v8 = vperm.slane %v161_v6, 0 }
  0xe3   :  { %v170_v9 = vadd.f32 %v168_v8, %v165_v7 }
  0xe5   :  { %v172_v10 = vmax.f32 %v170_v9, 0.0 }
  0xe7   :  { %212 = vmatmul.f32.vlgmr.msra.gmra.mxu1 %v172_v10 }
  0xef   :  { %215 = vmatmul.f32.gmra.mxu1 %v429_v11 }
 0x164   :  { %v508_v13 = vpop.f32.mrf.mxu1 }
 0x165   :  { %v226_v20 = vmul.f32 %v508_v13, %v508_v13 }
 0x16c   :  { %v216_v18 = vpop.f32.mrf.mxu1 }
 0x16d   :  { %v219_v21 = vadd.f32 %v216_v18, %v508_v13  ;;  %v227_v22 = vmul.f32 %v216_v18, %v216_v18 }
 0x16f   :  { %v220_v24 = vrot.slane %v219_v21, 4  ;;  %v228_v25 = vadd.f32 %v227_v22, %v226_v20 }
 0x171   :  { %v221_v27 = vadd.f32 %v220_v24, %v219_v21  ;;  %v229_v28 = vrot.slane %v228_v25, 4 }
 0x173   :  { %v222_v30 = vrot.slane %v221_v27, 2  ;;  %v230_v31 = vadd.f32 %v229_v28, %v228_v25 }
 0x175   :  { %v223_v33 = vadd.f32 %v222_v30, %v221_v27  ;;  %v231_v34 = vrot.slane %v230_v31, 2 }
 0x177   :  { %v224_v36 = vrot.slane %v223_v33, 1  ;;  %v232_v37 = vadd.f32 %v231_v34, %v230_v31 }
 0x179   :  { %v225_v39 = vadd.f32 %v224_v36, %v223_v33  ;;  %v233_v40 = vrot.slane %v232_v37, 1 }
 0x17b   :  { %v234_v42 = vadd.f32 %v233_v40, %v232_v37  ;;  %v235_v43 = vmul.f32 0.125, %v225_v39 }
 0x17d   :  { %v236_v45 = vmul.f32 0.125, %v234_v42  ;;  %v237_v46 = vmul.f32 %v235_v43, %v235_v43 }
 0x17f   :  { %v238_v48 = vsub.f32 %v236_v45, %v237_v46 }
 0x181   :  { %v239_v50 = vmax.f32 %v238_v48, 0.0 }
 0x183   :  { %v240_v51 = vadd.f32 1e-05, %v239_v50 }
 0x185   :  { %346 = vrsqrt.f32 %v240_v51  ;;  %vm247_vm4 = vweird.f32 %v240_v51 }
 0x18b   :  { %v347_v52 = vpop.eup %346 }
 0x18c   :  { %v242_v53 = vmul.f32 %v347_v52, %v240_v51  ;;  %vm248_vm3 = vweird.f32 %v347_v52 }
 0x18d   :  { %vm249_vm5 = vmor %vm247_vm4, %vm248_vm3 }
 0x18e   :  { %v243_v54 = vmul.f32 %v347_v52, %v242_v53 }
 0x190   :  { %v244_v55 = vmul.f32 0.5, %v243_v54 }
 0x192   :  { %v245_v56 = vsub.f32 1.5, %v244_v55 }
 0x194   :  { %v246_v57 = vmul.f32 %v347_v52, %v245_v56 }
 0x196   :  { %v250_v59 = vsel %vm249_vm5, %v347_v52, %v246_v57 }
 0x197   :  { %v252_v60 = vmul.f32 %v251_v58, %v250_v59 }
 0x199   :  { %v254_v62 = vmul.f32 %v252_v60, %v235_v43  ;;  %v257_v63 = vperm.slane %v252_v60, 0 }
 0x19b   :  { %v255_v0 = vsub.f32 %v253_v61, %v254_v62  ;;  %v259_v1 = vmul.f32 %v257_v63, %v508_v13 }
 0x19d   :  { %v262_v2 = vperm.slane %v255_v0, 0 }
 0x19f   :  { %v264_v3 = vadd.f32 %v262_v2, %v259_v1 }
 0x1a1   :  { %v266_v4 = vmax.f32 %v264_v3, 0.0 }
 0x1a3   :  { %306 = vmatmul.f32.vlgmr.msra.gmra.mxu2 %v266_v4 }
 0x1ab   :  { %309 = vmatmul.f32.gmra.mxu2 %v429_v11 }
 0x226   :  { %v307_v6 = vpop.f32.mrf.mxu2 }
 0x227   :  { %v308_v7 = vadd.f32 %v343_v5, %v307_v6 }
 0x229   :  { %313 = vst [vmem:[%s539_s9] sm:$0xff] %v308_v7 }
 0x22e   :  { %v310_v8 = vpop.f32.mrf.mxu2 }
 0x22f   :  { %v311_v9 = vadd.f32 %v343_v5, %v310_v8 }
 0x231   :  { %314 = vst [vmem:[%s539_s9 + $0x8] sm:$0xff] %v311_v9 }
 0x232   :  { %319 = vsyncpa [#allocation3], 1 }
 0x233   :  { %320 = vsyncpa [#allocation5], 1 }

</bundles_post_ra>
